<compile_context>
chip_gen: v7x
topology: tpu7x:2x2x1
jax: 0.10.0
libtpu: 0.0.40
codegen_flags: <defaults>
</compile_context>

<pallas_src>
from itertools import combinations

import numpy as np
import jax
import jax.numpy as jnp
from jax import lax
from jax.experimental import pallas as pl
from jax.experimental.pallas import tpu as pltpu

R = 1
SuperNetSetting = [
    [4, 8, 12, 16], [4, 8, 12, 16], [4, 8, 12, 16], [4, 8, 12, 16],
    [4, 8, 12, 16], [4, 8, 12, 16], [4, 8, 12, 16],
    [4, 8, 12, 16, 20, 24, 28, 32], [4, 8, 12, 16, 20, 24, 28, 32],
    [4, 8, 12, 16, 20, 24, 28, 32], [4, 8, 12, 16, 20, 24, 28, 32],
    [4, 8, 12, 16, 20, 24, 28, 32], [4, 8, 12, 16, 20, 24, 28, 32],
    [4, 8, 12, 16, 20, 24, 28, 32, 36, 40, 44, 48, 52, 56, 60, 64],
    [4, 8, 12, 16, 20, 24, 28, 32, 36, 40, 44, 48, 52, 56, 60, 64],
    [4, 8, 12, 16, 20, 24, 28, 32, 36, 40, 44, 48, 52, 56, 60, 64],
    [4, 8, 12, 16, 20, 24, 28, 32, 36, 40, 44, 48, 52, 56, 60, 64],
    [4, 8, 12, 16, 20, 24, 28, 32, 36, 40, 44, 48, 52, 56, 60, 64],
    [4, 8, 12, 16, 20, 24, 28, 32, 36, 40, 44, 48, 52, 56, 60, 64],
    [4, 8, 12, 16, 20, 24, 28, 32, 36, 40, 44, 48, 52, 56, 60, 64],
]

EPS = 1e-5                       # PyTorch BatchNorm2d default eps
MATMUL_DTYPE = jnp.float32       # set to jnp.bfloat16 for ~3x fewer MXU passes
                                 # (kept f32 to stay within tolerance)

# ----------------------------------------------------------------------------
# Mask buffer construction (faithful port of the module's __init__ logic).
# ----------------------------------------------------------------------------
_MASKS_CACHE = {}


def build_masks(layer_id):
    """Reproduce the module's `masks` buffer: (num_masks, len(setting), out_planes)."""
    if layer_id in _MASKS_CACHE:
        return _MASKS_CACHE[layer_id]
    setting = SuperNetSetting[layer_id]
    len_bin = setting[0]
    out_planes = setting[-1]
    combs = list(combinations(range(R * 2 + 1), R + 1))
    masks = np.zeros((len(combs), len(setting), out_planes), np.float32)
    for k, comb in enumerate(combs):
        for i, channel in enumerate(setting):
            max_C = out_planes // len_bin
            C = channel // len_bin
            base_end = C - R - 1
            free = []
            for part in comb:
                f = C - R + part
                if f > max_C:
                    j = max_C
                    while j in free and j > 1:
                        j -= 1
                    f = j
                free.append(f)
            if len(free) > C:
                free = free[-C:]
            if base_end > 0:
                masks[k, i, :base_end * len_bin] = 1
            for f in free:
                if 0 < f <= max_C:
                    masks[k, i, (f - 1) * len_bin:f * len_bin] = 1
            assert masks[k, i].sum() == channel
    _MASKS_CACHE[layer_id] = masks
    return masks


def mixed_mask(weight, layer_id, mask_index=0, lenth=None):
    """mixed_masks from the module forward (per-output-channel multiplier)."""
    masks = build_masks(layer_id)[mask_index]            # (len(setting), Cout)
    if lenth is None:
        return jnp.asarray(weight, jnp.float32) @ jnp.asarray(masks)
    assert lenth in SuperNetSetting[layer_id]
    index = SuperNetSetting[layer_id].index(lenth)
    return jnp.asarray(masks[index])


# ----------------------------------------------------------------------------
# Pallas forward.
# ----------------------------------------------------------------------------
def sample_local_free_convbn(x_nchw, conv_w_oihw, weight, *, layer_id,
                             mask_index=0, lenth=None):
    """SampleLocalFreeConvBN.forward as a Pallas TPU kernel.

    x_nchw      : (N, Cin, H, W) float32
    conv_w_oihw : (Cout, Cin, 3, 3) float32   (bias=False; a conv bias would be
                  exactly cancelled by the affine-free batch-stat BatchNorm)
    weight      : (len(SuperNetSetting[layer_id]),) architecture weights
    Returns (N, Cout, H, W) float32.
    """
    N, Cin, H, W = x_nchw.shape
    Cout, cin_w, kh, kw = conv_w_oihw.shape
    setting = SuperNetSetting[layer_id]
    assert Cout == setting[-1], "module asserts out_planes == setting[-1]"
    assert cin_w == Cin and (kh, kw) == (3, 3)
    assert W & (W - 1) == 0, "in-kernel stat folding assumes power-of-two W"

    # ---- layout plumbing (once, wrapper side): NCHW -> lane-dense padded rows ----
    x_nhwc = jnp.transpose(x_nchw, (0, 2, 3, 1)).astype(jnp.float32)
    xp = jnp.pad(x_nhwc, ((0, 0), (1, 1), (1, 1), (0, 0)))
    xp = xp.reshape(N, H + 2, (W + 2) * Cin)
    # Three dy-shifted row slabs, concatenated along K so the conv3x3 becomes
    # a single lane-dense matmul inside the kernel (no in-kernel slices).
    slabs = [xp[:, dy:dy + H, :].reshape(N * H, (W + 2) * Cin) for dy in range(3)]
    x_cat = jnp.concatenate(slabs, axis=-1).astype(MATMUL_DTYPE)  # (N*H, 3*(W+2)*Cin)

    # ---- banded weights: B_dy[(w+dx)*Cin + ci, w*Cout + co] = W_conv[co, ci, dy, dx] ----
    taps = jnp.transpose(conv_w_oihw.astype(jnp.float32), (2, 3, 1, 0))  # (3,3,Cin,Cout)
    eye_w = jnp.eye(W, dtype=jnp.float32)
    bands = []
    for dy in range(3):
        b = jnp.zeros(((W + 2) * Cin, W * Cout), jnp.float32)
        for dx in range(3):
            blk = jnp.kron(eye_w, taps[dy, dx])                   # (W*Cin, W*Cout)
            b = b + jnp.pad(blk, ((dx * Cin, (2 - dx) * Cin), (0, 0)))
        bands.append(b)
    w_cat = jnp.concatenate(bands, axis=0).astype(MATMUL_DTYPE)   # (3*(W+2)*Cin, W*Cout)

    # ---- mixed channel mask, pre-tiled to the lane-dense output layout ----
    m = mixed_mask(weight, layer_id, mask_index, lenth)            # (Cout,)
    m_row = jnp.tile(m, W).reshape(1, W * Cout).astype(jnp.float32)

    inv_count = 1.0 / float(N * H * W)

    def kernel(x_ref, w_ref, m_ref, o_ref):
        # conv3x3 (stride 1, pad 1): single lane-dense MXU matmul.
        acc = jnp.dot(x_ref[...], w_ref[...],
                      preferred_element_type=jnp.float32)          # (N*H, W*Cout) f32

        # BatchNorm batch statistics, single pass: sum and sum of squares.
        s1 = jnp.sum(acc, axis=0, keepdims=True)                   # (1, W*Cout)
        s2 = jnp.sum(acc * acc, axis=0, keepdims=True)             # (1, W*Cout)
        # Fold the W spatial positions into per-channel totals -- already
        # broadcast back to every lane position -- using log2(W) cyclic lane
        # rolls on the (otherwise idle) XLU, keeping stats exact f32.
        shift = Cout
        while shift < W * Cout:
            s1 = s1 + pltpu.roll(s1, shift, 1)
            s2 = s2 + pltpu.roll(s2, shift, 1)
            shift *= 2
        mean_b = s1 * inv_count
        var_b = s2 * inv_count - mean_b * mean_b                   # biased variance

        # Fuse normalize + mixed channel mask into one scale/offset pair so the
        # per-element epilogue is a single multiply-add; lane-dense store.
        alpha = lax.rsqrt(var_b + EPS) * m_ref[...]                # (1, W*Cout)
        beta = -mean_b * alpha
        o_ref[...] = acc * alpha + beta

    out2d = pl.pallas_call(
        kernel,
        out_shape=jax.ShapeDtypeStruct((N * H, W * Cout), jnp.float32),
        in_specs=[pl.BlockSpec(memory_space=pltpu.MemorySpace.VMEM)] * 3,
        out_specs=pl.BlockSpec(memory_space=pltpu.MemorySpace.VMEM),
        compiler_params=pltpu.CompilerParams(vmem_limit_bytes=32 * 1024 * 1024),
    )(x_cat, w_cat, m_row)

    # lane-dense (N*H, W*Cout) slab -> NCHW (layout plumbing only).
    return jnp.transpose(out2d.reshape(N, H, W, Cout), (0, 3, 1, 2))


# ----------------------------------------------------------------------------
# Pure-JAX reference (PyTorch semantics) for verification.
# ----------------------------------------------------------------------------
def ref_forward(x_nchw, conv_w_oihw, weight, *, layer_id, mask_index=0, lenth=None):
    out = lax.conv_general_dilated(
        x_nchw.astype(jnp.float32), conv_w_oihw.astype(jnp.float32),
        window_strides=(1, 1), padding=((1, 1), (1, 1)),
        dimension_numbers=("NCHW", "OIHW", "NCHW"))
    mu = jnp.mean(out, axis=(0, 2, 3), keepdims=True)
    var = jnp.mean((out - mu) ** 2, axis=(0, 2, 3), keepdims=True)
    out = (out - mu) / jnp.sqrt(var + EPS)
    m = mixed_mask(weight, layer_id, mask_index, lenth)
    return out * m[None, :, None, None]


if __name__ == "__main__":
    key = jax.random.PRNGKey(0)
    k1, k2, k3 = jax.random.split(key, 3)

    layer_id = 1                                  # SuperNetSetting[1] = [4, 8, 12, 16]
    N, Cin, H, W = 2, 16, 16, 16                  # in_planes = max width of layer 0
    Cout = SuperNetSetting[layer_id][-1]          # 16

    x = jax.random.normal(k1, (N, Cin, H, W), jnp.float32)
    conv_w = jax.random.normal(k2, (Cout, Cin, 3, 3), jnp.float32) * 0.1
    arch_w = jax.nn.softmax(jax.random.normal(k3, (len(SuperNetSetting[layer_id]),)))

    # lenth=None path (weighted mixture of masks).
    out = jax.block_until_ready(
        sample_local_free_convbn(x, conv_w, arch_w, layer_id=layer_id))
    ref = ref_forward(x, conv_w, arch_w, layer_id=layer_id)
    err = float(jnp.max(jnp.abs(out - ref)))
    if out.shape != ref.shape or not err < 1e-3:
        raise AssertionError(f"lenth=None mismatch vs reference: max abs err = {err}")

    # lenth-selected single-mask path.
    out_l = jax.block_until_ready(
        sample_local_free_convbn(x, conv_w, arch_w, layer_id=layer_id, lenth=8))
    ref_l = ref_forward(x, conv_w, arch_w, layer_id=layer_id, lenth=8)
    err_l = float(jnp.max(jnp.abs(out_l - ref_l)))
    if out_l.shape != ref_l.shape or not err_l < 1e-3:
        raise AssertionError(f"lenth=8 mismatch vs reference: max abs err = {err_l}")

    print("KERNEL_OK")
</pallas_src>

<mosaic_0001>
module attributes {stable_mosaic.version = 11 : i64} {
  func.func @kernel(%arg0: memref<32x864xf32, #tpu.memory_space<vmem>>, %arg1: memref<864x256xf32, #tpu.memory_space<vmem>>, %arg2: memref<1x256xf32, #tpu.memory_space<vmem>>, %arg3: memref<32x256xf32, #tpu.memory_space<vmem>>) attributes {dimension_semantics = [], scalar_prefetch = 0 : i64, scratch_operands = 0 : i64, tpu.core_type = #tpu.core_type<tc>} {
    %c0 = arith.constant 0 : index
    %c0_0 = arith.constant 0 : index
    %0 = vector.load %arg0[%c0, %c0_0] : memref<32x864xf32, #tpu.memory_space<vmem>>, vector<32x864xf32>
    %c0_1 = arith.constant 0 : index
    %c0_2 = arith.constant 0 : index
    %1 = vector.load %arg1[%c0_1, %c0_2] : memref<864x256xf32, #tpu.memory_space<vmem>>, vector<864x256xf32>
    %cst = arith.constant dense<0.000000e+00> : vector<32x256xf32>
    %2 = tpu.matmul %0, %1, %cst {dimension_numbers = #tpu.dot_dimension_numbers<[1], [0], [0], [1], [0, 0, 1, 1], [], []>} : vector<32x864xf32>, vector<864x256xf32>, vector<32x256xf32> -> vector<32x256xf32>
    %cst_3 = arith.constant dense<0.000000e+00> : vector<256xf32>
    %3 = vector.multi_reduction <add>, %2, %cst_3 [0] : vector<32x256xf32> to vector<256xf32>
    %4 = vector.shape_cast %3 : vector<256xf32> to vector<1x256xf32>
    %5 = arith.mulf %2, %2 : vector<32x256xf32>
    %cst_4 = arith.constant dense<0.000000e+00> : vector<256xf32>
    %6 = vector.multi_reduction <add>, %5, %cst_4 [0] : vector<32x256xf32> to vector<256xf32>
    %7 = vector.shape_cast %6 : vector<256xf32> to vector<1x256xf32>
    %c16_i32 = arith.constant 16 : i32
    %8 = tpu.dynamic_rotate %4 by %c16_i32 dim 1 : vector<1x256xf32>, i32 -> vector<1x256xf32>
    %9 = arith.addf %4, %8 : vector<1x256xf32>
    %c16_i32_5 = arith.constant 16 : i32
    %10 = tpu.dynamic_rotate %7 by %c16_i32_5 dim 1 : vector<1x256xf32>, i32 -> vector<1x256xf32>
    %11 = arith.addf %7, %10 : vector<1x256xf32>
    %c32_i32 = arith.constant 32 : i32
    %12 = tpu.dynamic_rotate %9 by %c32_i32 dim 1 : vector<1x256xf32>, i32 -> vector<1x256xf32>
    %13 = arith.addf %9, %12 : vector<1x256xf32>
    %c32_i32_6 = arith.constant 32 : i32
    %14 = tpu.dynamic_rotate %11 by %c32_i32_6 dim 1 : vector<1x256xf32>, i32 -> vector<1x256xf32>
    %15 = arith.addf %11, %14 : vector<1x256xf32>
    %c64_i32 = arith.constant 64 : i32
    %16 = tpu.dynamic_rotate %13 by %c64_i32 dim 1 : vector<1x256xf32>, i32 -> vector<1x256xf32>
    %17 = arith.addf %13, %16 : vector<1x256xf32>
    %c64_i32_7 = arith.constant 64 : i32
    %18 = tpu.dynamic_rotate %15 by %c64_i32_7 dim 1 : vector<1x256xf32>, i32 -> vector<1x256xf32>
    %19 = arith.addf %15, %18 : vector<1x256xf32>
    %c128_i32 = arith.constant 128 : i32
    %20 = tpu.dynamic_rotate %17 by %c128_i32 dim 1 : vector<1x256xf32>, i32 -> vector<1x256xf32>
    %21 = arith.addf %17, %20 : vector<1x256xf32>
    %c128_i32_8 = arith.constant 128 : i32
    %22 = tpu.dynamic_rotate %19 by %c128_i32_8 dim 1 : vector<1x256xf32>, i32 -> vector<1x256xf32>
    %23 = arith.addf %19, %22 : vector<1x256xf32>
    %cst_9 = arith.constant 0.001953125 : f32
    %24 = vector.broadcast %cst_9 : f32 to vector<1x256xf32>
    %25 = arith.mulf %21, %24 : vector<1x256xf32>
    %cst_10 = arith.constant 0.001953125 : f32
    %26 = vector.broadcast %cst_10 : f32 to vector<1x256xf32>
    %27 = arith.mulf %23, %26 : vector<1x256xf32>
    %28 = arith.mulf %25, %25 : vector<1x256xf32>
    %29 = arith.subf %27, %28 : vector<1x256xf32>
    %cst_11 = arith.constant 9.99999974E-6 : f32
    %30 = vector.broadcast %cst_11 : f32 to vector<1x256xf32>
    %31 = arith.addf %29, %30 : vector<1x256xf32>
    %32 = math.rsqrt %31 : vector<1x256xf32>
    %c0_12 = arith.constant 0 : index
    %c0_13 = arith.constant 0 : index
    %33 = vector.load %arg2[%c0_12, %c0_13] : memref<1x256xf32, #tpu.memory_space<vmem>>, vector<1x256xf32>
    %34 = arith.mulf %32, %33 : vector<1x256xf32>
    %cst_14 = arith.constant 0.000000e+00 : f32
    %35 = vector.broadcast %cst_14 : f32 to vector<1x256xf32>
    %36 = arith.subf %35, %25 : vector<1x256xf32>
    %37 = arith.mulf %36, %34 : vector<1x256xf32>
    %38 = vector.broadcast %34 : vector<1x256xf32> to vector<32x256xf32>
    %39 = arith.mulf %2, %38 : vector<32x256xf32>
    %40 = vector.broadcast %37 : vector<1x256xf32> to vector<32x256xf32>
    %41 = arith.addf %39, %40 : vector<32x256xf32>
    %c0_15 = arith.constant 0 : index
    %c0_16 = arith.constant 0 : index
    %42 = vector.load %arg3[%c0_15, %c0_16] : memref<32x256xf32, #tpu.memory_space<vmem>>, vector<32x256xf32>
    tpu.vector_store %arg3[%c0_15, %c0_16], %41 {strides = array<i32>} : memref<32x256xf32, #tpu.memory_space<vmem>>, vector<32x256xf32>,
    return
  }
}

</mosaic_0001>

<bundles_post_ra>
// kernel: tpu_custom_call.1
= control target key start
LH: loop header
LB: loop body
LE: loop exit
PB: predicated region body
PF: predicated region fallthrough
CT: control target
= control target key end

     0   :  { %8 = vsyncpa [#allocation3], 0  ;;  %s1295_s0 = inlined_call_operand.hbm [shape: f32[32,864], index: 0, kind: input, shape index: {}]   ;;  %s1296_s1 = inlined_call_operand.hbm [shape: f32[864,256], index: 1, kind: input, shape index: {}]   ;;  %s1297_s2 = inlined_call_operand.vmem [shape: f32[1,256], index: 2, kind: input, shape index: {}]   ;;  %s1298_s3 = inlined_call_operand.hbm [shape: f32[32,256], index: 3, kind: output, shape index: {}]  }
   0x1   :  { %9 = vsyncpa [#allocation6], 0 }
   0x2   :  { %10 = vsyncpa [#allocation4], 0  ;;  %s1164_s12 = smov [#allocation2]   ;;  %s1092_s16 = scalar_lea.hbm %s1295_s0, 3584 }
   0x3   :  { %s16_s13 = sshll.u32 %s1164_s12, 4  ;;  %p1093_p0 = scmp.ne.s32.totalorder %s1295_s0, %s1092_s16  ;;  %s17_s13 = int_to_ptr.vmem [resolvable:$true] %s16_s13 }
   0x4   :  { %p1096_p1 = scmp.lt.u32.totalorder %s1092_s16, %s1295_s0 }
   0x6   :  { %p1098_p2 = pnand %p1096_p1, %p1093_p0 }
   0x8   :  { %1101 = shalt.err (!%p1098_p2)
}
   0x9   :  { %s1102_s21 = scalar_lea.vmem %s17_s13, 3584  ;;  %p1107_p4 = scmp.lt.s32.totalorder %s17_s13, %s17_s13 }
   0xa   :  { %p1103_p3 = scmp.ne.s32.totalorder %s17_s13, %s1102_s21  ;;  %p1108_p5 = scmp.lt.s32.totalorder %s1102_s21, %s1102_s21 }
   0xc   :  { %p1109_p6 = por %p1108_p5, %p1107_p4 }
   0xe   :  { %p1110_p7 = pnand %p1109_p6, %p1103_p3 }
  0x10   :  { %1113 = shalt.err (!%p1110_p7)
}
  0x11   :  { %s1165_s22 = smov 896   ;;  %s1166_s23 = smov 56  }
  0x12   :  { %22 = dma.hbm_to_vmem [thread:$0]  %s1295_s0, 3584, %s17_s13, [#allocation3], %s1165_s22, %s1165_s22, %s1166_s23  }
  0x13   :  { %s1167_s26 = smov [#allocation5]   ;;  %s1114_s30 = scalar_lea.hbm %s1296_s1, 27648 }
  0x14   :  { %s28_s27 = sshll.u32 %s1167_s26, 4  ;;  %p1115_p8 = scmp.ne.s32.totalorder %s1296_s1, %s1114_s30  ;;  %s29_s27 = int_to_ptr.vmem [resolvable:$true] %s28_s27 }
  0x15   :  { %p1118_p9 = scmp.lt.u32.totalorder %s1114_s30, %s1296_s1 }
  0x17   :  { %p1120_p10 = pnand %p1118_p9, %p1115_p8 }
  0x19   :  { %1123 = shalt.err (!%p1120_p10)
}
  0x1a   :  { %s1124_s8 = scalar_lea.vmem %s29_s27, 27648  ;;  %p1129_p12 = scmp.lt.s32.totalorder %s29_s27, %s29_s27 }
  0x1b   :  { %p1125_p11 = scmp.ne.s32.totalorder %s29_s27, %s1124_s8  ;;  %p1130_p13 = scmp.lt.s32.totalorder %s1124_s8, %s1124_s8 }
  0x1d   :  { %p1131_p0 = por %p1130_p13, %p1129_p12 }
  0x1f   :  { %p1132_p1 = pnand %p1131_p0, %p1125_p11 }
  0x21   :  { %1135 = shalt.err (!%p1132_p1)
}
  0x22   :  { %s1168_s0 = smov 256   ;;  %s1169_s9 = smov 16  }
  0x23   :  { %34 = dma.hbm_to_vmem [thread:$0]  %s1296_s1, 27648, %s29_s27, [#allocation6], %s1168_s0, %s1168_s0, %s1169_s9  }
  0x24   :  { %1158 = dma.done.wait [#allocation3], 3584  }
  0x25   :  { %1159 = vsyncadd [#allocation3], 4294963712 }
  0x26   :  { %1160 = dma.done.wait [#allocation6], 27648  }
  0x27   :  { %1161 = vsyncadd [#allocation6], 4294939648  ;;  %v72_v0 = vld [vmem:[#allocation5 + $0x8] sm:$0xff]  ;;  %v74_v1 = vld [vmem:[#allocation5 + $0x18] sm:$0xff]  ;;  %vm287_vm0 = vcmask 785408   ;;  %s1171_s1 = smov 32  }
  0x28   :  { %v71_v2 = vld [vmem:[#allocation5] sm:$0xff]  ;;  %v840_v3 = vpack.c.bf16 %v74_v1, %v72_v0  ;;  %v73_v4 = vld [vmem:[#allocation5 + $0x10] sm:$0xff]  ;;  %v76_v5 = vld [vmem:[#allocation5 + $0x28] sm:$0xff]  ;;  %s1172_s12 = smov 64  }
  0x29   :  { %v78_v6 = vld [vmem:[#allocation5 + $0x38] sm:$0xff]  ;;  %v842_v7 = vpack.c.bf16 %v73_v4, %v71_v2  ;;  %v75_v9 = vld [vmem:[#allocation5 + $0x20] sm:$0xff]  ;;  %v77_v10 = vld [vmem:[#allocation5 + $0x30] sm:$0xff] }
  0x2a   :  { %v844_v8 = vpack.c.bf16 %v78_v6, %v76_v5  ;;  %v80_v11 = vld [vmem:[#allocation5 + $0x48] sm:$0xff]  ;;  %841 = vmatprep.subr.bf16.mxu1 %v840_v3  ;;  %v82_v12 = vld [vmem:[#allocation5 + $0x58] sm:$0xff]  ;;  %v846_v13 = vpack.c.bf16 %v77_v10, %v75_v9  ;;  %v79_v15 = vld [vmem:[#allocation5 + $0x40] sm:$0xff] }
  0x2b   :  { %843 = vmatpush1.bf16.msra.mxu1 %v842_v7  ;;  %v848_v14 = vpack.c.bf16 %v82_v12, %v80_v11  ;;  %v81_v16 = vld [vmem:[#allocation5 + $0x50] sm:$0xff]  ;;  %v84_v17 = vld [vmem:[#allocation5 + $0x68] sm:$0xff]  ;;  %v86_v18 = vld [vmem:[#allocation5 + $0x78] sm:$0xff] }
  0x2c   :  { %845 = vmatprep.subr.bf16.mxu1 %v844_v8  ;;  %v200_v19 = vld [vmem:[#allocation5 + $0x408] sm:$0xff]  ;;  %v202_v20 = vld [vmem:[#allocation5 + $0x418] sm:$0xff]  ;;  %v199_v22 = vld [vmem:[#allocation5 + $0x400] sm:$0xff]  ;;  %v850_v24 = vpack.c.bf16 %v81_v16, %v79_v15  ;;  %v852_v28 = vpack.c.bf16 %v86_v18, %v84_v17 }
  0x2d   :  { %v968_v21 = vpack.c.bf16 %v202_v20, %v200_v19  ;;  %v201_v23 = vld [vmem:[#allocation5 + $0x410] sm:$0xff]  ;;  %v83_v25 = vld [vmem:[#allocation5 + $0x60] sm:$0xff]  ;;  %v204_v27 = vld [vmem:[#allocation5 + $0x428] sm:$0xff] }
  0x2e   :  { %v970_v26 = vpack.c.bf16 %v201_v23, %v199_v22  ;;  %v85_v29 = vld [vmem:[#allocation5 + $0x70] sm:$0xff]  ;;  %v88_v30 = vld [vmem:[#allocation5 + $0x88] sm:$0xff]  ;;  %v206_v31 = vld [vmem:[#allocation5 + $0x438] sm:$0xff] }
  0x2f   :  { %847 = vmatpush1.bf16.msra.mxu1 %v846_v13  ;;  %969 = vmatprep.subr.bf16.mxu0 %v968_v21  ;;  %v90_v32 = vld [vmem:[#allocation5 + $0x98] sm:$0xff]  ;;  %v972_v33 = vpack.c.bf16 %v206_v31, %v204_v27  ;;  %v203_v34 = vld [vmem:[#allocation5 + $0x420] sm:$0xff]  ;;  %v205_v35 = vld [vmem:[#allocation5 + $0x430] sm:$0xff]  ;;  %v854_v39 = vpack.c.bf16 %v85_v29, %v83_v25 }
  0x30   :  { %849 = vmatprep.subr.bf16.mxu1 %v848_v14  ;;  %971 = vmatpush1.bf16.msra.mxu0 %v970_v26  ;;  %v974_v36 = vpack.c.bf16 %v205_v35, %v203_v34  ;;  %v208_v37 = vld [vmem:[#allocation5 + $0x448] sm:$0xff]  ;;  %v210_v38 = vld [vmem:[#allocation5 + $0x458] sm:$0xff]  ;;  %v87_v40 = vld [vmem:[#allocation5 + $0x80] sm:$0xff]  ;;  %v856_v43 = vpack.c.bf16 %v90_v32, %v88_v30 }
  0x31   :  { %973 = vmatprep.subr.bf16.mxu0 %v972_v33  ;;  %v976_v41 = vpack.c.bf16 %v210_v38, %v208_v37  ;;  %v207_v42 = vld [vmem:[#allocation5 + $0x440] sm:$0xff]  ;;  %v89_v44 = vld [vmem:[#allocation5 + $0x90] sm:$0xff]  ;;  %v92_v45 = vld [vmem:[#allocation5 + $0xa8] sm:$0xff] }
  0x32   :  { %v209_v46 = vld [vmem:[#allocation5 + $0x450] sm:$0xff]  ;;  %v94_v47 = vld [vmem:[#allocation5 + $0xb8] sm:$0xff]  ;;  %v212_v49 = vld [vmem:[#allocation5 + $0x468] sm:$0xff]  ;;  %v858_v54 = vpack.c.bf16 %v89_v44, %v87_v40 }
  0x33   :  { %851 = vmatpush1.bf16.msra.mxu1 %v850_v24  ;;  %v978_v48 = vpack.c.bf16 %v209_v46, %v207_v42  ;;  %v214_v50 = vld [vmem:[#allocation5 + $0x478] sm:$0xff]  ;;  %v211_v52 = vld [vmem:[#allocation5 + $0x460] sm:$0xff]  ;;  %v213_v53 = vld [vmem:[#allocation5 + $0x470] sm:$0xff]  ;;  %v860_v56 = vpack.c.bf16 %v94_v47, %v92_v45 }
  0x34   :  { %853 = vmatprep.subr.bf16.mxu1 %v852_v28  ;;  %975 = vmatpush1.bf16.msra.mxu0 %v974_v36  ;;  %v980_v51 = vpack.c.bf16 %v214_v50, %v212_v49  ;;  %v216_v55 = vld [vmem:[#allocation5 + $0x488] sm:$0xff]  ;;  %v91_v57 = vld [vmem:[#allocation5 + $0xa0] sm:$0xff]  ;;  %v93_v58 = vld [vmem:[#allocation5 + $0xb0] sm:$0xff]  ;;  %v982_v62 = vpack.c.bf16 %v213_v53, %v211_v52 }
  0x35   :  { %977 = vmatprep.subr.bf16.mxu0 %v976_v41  ;;  %v218_v59 = vld [vmem:[#allocation5 + $0x498] sm:$0xff]  ;;  %v96_v60 = vld [vmem:[#allocation5 + $0xc8] sm:$0xff]  ;;  %v215_v0 = vld [vmem:[#allocation5 + $0x480] sm:$0xff]  ;;  %v862_v2 = vpack.c.bf16 %v93_v58, %v91_v57 }
  0x36   :  { %v98_v61 = vld [vmem:[#allocation5 + $0xd8] sm:$0xff]  ;;  %v984_v63 = vpack.c.bf16 %v218_v59, %v216_v55  ;;  %v217_v1 = vld [vmem:[#allocation5 + $0x490] sm:$0xff]  ;;  %v220_v3 = vld [vmem:[#allocation5 + $0x4a8] sm:$0xff] }
  0x37   :  { %855 = vmatpush1.bf16.msra.mxu1 %v854_v39  ;;  %v222_v4 = vld [vmem:[#allocation5 + $0x4b8] sm:$0xff]  ;;  %v864_v5 = vpack.c.bf16 %v98_v61, %v96_v60  ;;  %v95_v6 = vld [vmem:[#allocation5 + $0xc0] sm:$0xff]  ;;  %v97_v7 = vld [vmem:[#allocation5 + $0xd0] sm:$0xff]  ;;  %v986_v10 = vpack.c.bf16 %v217_v1, %v215_v0 }
  0x38   :  { %857 = vmatprep.subr.bf16.mxu1 %v856_v43  ;;  %979 = vmatpush1.bf16.msra.mxu0 %v978_v48  ;;  %v100_v8 = vld [vmem:[#allocation5 + $0xe8] sm:$0xff]  ;;  %v102_v9 = vld [vmem:[#allocation5 + $0xf8] sm:$0xff]  ;;  %v988_v11 = vpack.c.bf16 %v222_v4, %v220_v3  ;;  %v219_v12 = vld [vmem:[#allocation5 + $0x4a0] sm:$0xff]  ;;  %v866_v14 = vpack.c.bf16 %v97_v7, %v95_v6 }
  0x39   :  { %981 = vmatprep.subr.bf16.mxu0 %v980_v51  ;;  %v221_v13 = vld [vmem:[#allocation5 + $0x4b0] sm:$0xff]  ;;  %v224_v15 = vld [vmem:[#allocation5 + $0x4c8] sm:$0xff]  ;;  %v226_v16 = vld [vmem:[#allocation5 + $0x4d8] sm:$0xff]  ;;  %v868_v17 = vpack.c.bf16 %v102_v9, %v100_v8 }
  0x3a   :  { %v99_v18 = vld [vmem:[#allocation5 + $0xe0] sm:$0xff]  ;;  %v101_v19 = vld [vmem:[#allocation5 + $0xf0] sm:$0xff]  ;;  %v104_v20 = vld [vmem:[#allocation5 + $0x108] sm:$0xff]  ;;  %v990_v22 = vpack.c.bf16 %v221_v13, %v219_v12  ;;  %v992_v23 = vpack.c.bf16 %v226_v16, %v224_v15 }
  0x3b   :  { %859 = vmatpush1.bf16.msra.mxu1 %v858_v54  ;;  %v106_v21 = vld [vmem:[#allocation5 + $0x118] sm:$0xff]  ;;  %v223_v24 = vld [vmem:[#allocation5 + $0x4c0] sm:$0xff]  ;;  %v225_v25 = vld [vmem:[#allocation5 + $0x4d0] sm:$0xff]  ;;  %v870_v26 = vpack.c.bf16 %v101_v19, %v99_v18 }
  0x3c   :  { %861 = vmatprep.subr.bf16.mxu1 %v860_v56  ;;  %983 = vmatpush1.bf16.msra.mxu0 %v982_v62  ;;  %v228_v27 = vld [vmem:[#allocation5 + $0x4e8] sm:$0xff]  ;;  %v230_v28 = vld [vmem:[#allocation5 + $0x4f8] sm:$0xff]  ;;  %v872_v29 = vpack.c.bf16 %v106_v21, %v104_v20  ;;  %v103_v30 = vld [vmem:[#allocation5 + $0x100] sm:$0xff]  ;;  %v994_v34 = vpack.c.bf16 %v225_v25, %v223_v24 }
  0x3d   :  { %985 = vmatprep.subr.bf16.mxu0 %v984_v63  ;;  %v105_v31 = vld [vmem:[#allocation5 + $0x110] sm:$0xff]  ;;  %v108_v32 = vld [vmem:[#allocation5 + $0x128] sm:$0xff]  ;;  %v110_v33 = vld [vmem:[#allocation5 + $0x138] sm:$0xff]  ;;  %v996_v35 = vpack.c.bf16 %v230_v28, %v228_v27 }
  0x3e   :  { %v227_v36 = vld [vmem:[#allocation5 + $0x4e0] sm:$0xff]  ;;  %v229_v37 = vld [vmem:[#allocation5 + $0x4f0] sm:$0xff]  ;;  %v874_v38 = vpack.c.bf16 %v105_v31, %v103_v30  ;;  %v232_v39 = vld [vmem:[#allocation5 + $0x508] sm:$0xff]  ;;  %v876_v41 = vpack.c.bf16 %v110_v33, %v108_v32 }
  0x3f   :  { %863 = vmatpush1.bf16.msra.mxu1 %v862_v2  ;;  %v234_v40 = vld [vmem:[#allocation5 + $0x518] sm:$0xff]  ;;  %v107_v42 = vld [vmem:[#allocation5 + $0x120] sm:$0xff]  ;;  %v109_v43 = vld [vmem:[#allocation5 + $0x130] sm:$0xff]  ;;  %v998_v46 = vpack.c.bf16 %v229_v37, %v227_v36 }
  0x40   :  { %865 = vmatprep.subr.bf16.mxu1 %v864_v5  ;;  %987 = vmatpush1.bf16.msra.mxu0 %v986_v10  ;;  %v112_v44 = vld [vmem:[#allocation5 + $0x148] sm:$0xff]  ;;  %v114_v45 = vld [vmem:[#allocation5 + $0x158] sm:$0xff]  ;;  %v1000_v47 = vpack.c.bf16 %v234_v40, %v232_v39  ;;  %v231_v48 = vld [vmem:[#allocation5 + $0x500] sm:$0xff]  ;;  %v878_v50 = vpack.c.bf16 %v109_v43, %v107_v42 }
  0x41   :  { %989 = vmatprep.subr.bf16.mxu0 %v988_v11  ;;  %v233_v49 = vld [vmem:[#allocation5 + $0x510] sm:$0xff]  ;;  %v236_v51 = vld [vmem:[#allocation5 + $0x528] sm:$0xff]  ;;  %v238_v52 = vld [vmem:[#allocation5 + $0x538] sm:$0xff]  ;;  %v880_v53 = vpack.c.bf16 %v114_v45, %v112_v44 }
  0x42   :  { %v111_v54 = vld [vmem:[#allocation5 + $0x140] sm:$0xff]  ;;  %v113_v55 = vld [vmem:[#allocation5 + $0x150] sm:$0xff]  ;;  %v44_v56 = vld [vmem:[#allocation2 + $0x8] sm:$0xff]  ;;  %v1002_v59 = vpack.c.bf16 %v233_v49, %v231_v48  ;;  %v1004_v60 = vpack.c.bf16 %v238_v52, %v236_v51 }
  0x43   :  { %867 = vmatpush1.bf16.msra.mxu1 %v866_v14  ;;  %v116_v57 = vld [vmem:[#allocation5 + $0x168] sm:$0xff]  ;;  %v118_v58 = vld [vmem:[#allocation5 + $0x178] sm:$0xff]  ;;  %364 = vmatprep.mubr.f32.mxu1 %v44_v56  ;;  %v235_v61 = vld [vmem:[#allocation5 + $0x520] sm:$0xff]  ;;  %v882_v63 = vpack.c.bf16 %v113_v55, %v111_v54 }
  0x44   :  { %869 = vmatprep.subr.bf16.mxu1 %v868_v17  ;;  %991 = vmatpush1.bf16.msra.mxu0 %v990_v22  ;;  %v237_v62 = vld [vmem:[#allocation5 + $0x530] sm:$0xff]  ;;  %v240_v0 = vld [vmem:[#allocation5 + $0x548] sm:$0xff]  ;;  %v242_v1 = vld [vmem:[#allocation5 + $0x558] sm:$0xff]  ;;  %v884_v2 = vpack.c.bf16 %v118_v58, %v116_v57 }
  0x45   :  { %993 = vmatprep.subr.bf16.mxu0 %v992_v23  ;;  %v115_v3 = vld [vmem:[#allocation5 + $0x160] sm:$0xff]  ;;  %v117_v4 = vld [vmem:[#allocation5 + $0x170] sm:$0xff]  ;;  %v120_v5 = vld [vmem:[#allocation5 + $0x188] sm:$0xff]  ;;  %v1006_v7 = vpack.c.bf16 %v237_v62, %v235_v61  ;;  %v1008_v8 = vpack.c.bf16 %v242_v1, %v240_v0 }
  0x46   :  { %v122_v6 = vld [vmem:[#allocation5 + $0x198] sm:$0xff]  ;;  %v239_v9 = vld [vmem:[#allocation5 + $0x540] sm:$0xff]  ;;  %v241_v10 = vld [vmem:[#allocation5 + $0x550] sm:$0xff]  ;;  %v886_v11 = vpack.c.bf16 %v117_v4, %v115_v3 }
  0x47   :  { %871 = vmatpush1.bf16.msra.mxu1 %v870_v26  ;;  %v244_v12 = vld [vmem:[#allocation5 + $0x568] sm:$0xff]  ;;  %v246_v13 = vld [vmem:[#allocation5 + $0x578] sm:$0xff]  ;;  %v888_v14 = vpack.c.bf16 %v122_v6, %v120_v5  ;;  %v119_v15 = vld [vmem:[#allocation5 + $0x180] sm:$0xff]  ;;  %v1010_v19 = vpack.c.bf16 %v241_v10, %v239_v9 }
  0x48   :  { %873 = vmatprep.subr.bf16.mxu1 %v872_v29  ;;  %995 = vmatpush1.bf16.msra.mxu0 %v994_v34  ;;  %v121_v16 = vld [vmem:[#allocation5 + $0x190] sm:$0xff]  ;;  %v124_v17 = vld [vmem:[#allocation5 + $0x1a8] sm:$0xff]  ;;  %v126_v18 = vld [vmem:[#allocation5 + $0x1b8] sm:$0xff]  ;;  %v1012_v20 = vpack.c.bf16 %v246_v13, %v244_v12 }
  0x49   :  { %997 = vmatprep.subr.bf16.mxu0 %v996_v35  ;;  %v243_v21 = vld [vmem:[#allocation5 + $0x560] sm:$0xff]  ;;  %v245_v22 = vld [vmem:[#allocation5 + $0x570] sm:$0xff]  ;;  %v890_v23 = vpack.c.bf16 %v121_v16, %v119_v15  ;;  %v248_v24 = vld [vmem:[#allocation5 + $0x588] sm:$0xff]  ;;  %v892_v26 = vpack.c.bf16 %v126_v18, %v124_v17 }
  0x4a   :  { %v250_v25 = vld [vmem:[#allocation5 + $0x598] sm:$0xff]  ;;  %v123_v27 = vld [vmem:[#allocation5 + $0x1a0] sm:$0xff]  ;;  %v125_v28 = vld [vmem:[#allocation5 + $0x1b0] sm:$0xff]  ;;  %v1014_v32 = vpack.c.bf16 %v245_v22, %v243_v21 }
  0x4b   :  { %875 = vmatpush1.bf16.msra.mxu1 %v874_v38  ;;  %v48_v29 = vld [vmem:[#allocation2 + $0x28] sm:$0xff]  ;;  %v130_v31 = vld [vmem:[#allocation5 + $0x1d8] sm:$0xff]  ;;  %v1016_v33 = vpack.c.bf16 %v250_v25, %v248_v24  ;;  %v247_v34 = vld [vmem:[#allocation5 + $0x580] sm:$0xff]  ;;  %v894_v36 = vpack.c.bf16 %v125_v28, %v123_v27 }
  0x4c   :  { %877 = vmatprep.subr.bf16.mxu1 %v876_v41  ;;  %999 = vmatpush1.bf16.msra.mxu0 %v998_v46  ;;  %v128_v30 = vld [vmem:[#allocation5 + $0x1c8] sm:$0xff]  ;;  %v249_v35 = vld [vmem:[#allocation5 + $0x590] sm:$0xff]  ;;  %v254_v38 = vld [vmem:[#allocation5 + $0x5b8] sm:$0xff] }
  0x4d   :  { %1001 = vmatprep.subr.bf16.mxu0 %v1000_v47  ;;  %542 = vmatprep.mubr.f32.mxu0 %v48_v29  ;;  %v252_v37 = vld [vmem:[#allocation5 + $0x5a8] sm:$0xff]  ;;  %v896_v39 = vpack.c.bf16 %v130_v31, %v128_v30  ;;  %v127_v40 = vld [vmem:[#allocation5 + $0x1c0] sm:$0xff]  ;;  %v129_v41 = vld [vmem:[#allocation5 + $0x1d0] sm:$0xff]  ;;  %v1018_v44 = vpack.c.bf16 %v249_v35, %v247_v34 }
  0x4e   :  { %v132_v42 = vld [vmem:[#allocation5 + $0x1e8] sm:$0xff]  ;;  %v134_v43 = vld [vmem:[#allocation5 + $0x1f8] sm:$0xff]  ;;  %v1020_v45 = vpack.c.bf16 %v254_v38, %v252_v37  ;;  %v251_v46 = vld [vmem:[#allocation5 + $0x5a0] sm:$0xff]  ;;  %v898_v48 = vpack.c.bf16 %v129_v41, %v127_v40 }
  0x4f   :  { %879 = vmatpush1.bf16.msra.mxu1 %v878_v50  ;;  %v253_v47 = vld [vmem:[#allocation5 + $0x5b0] sm:$0xff]  ;;  %v256_v49 = vld [vmem:[#allocation5 + $0x5c8] sm:$0xff]  ;;  %v258_v50 = vld [vmem:[#allocation5 + $0x5d8] sm:$0xff]  ;;  %v900_v51 = vpack.c.bf16 %v134_v43, %v132_v42 }
  0x50   :  { %881 = vmatprep.subr.bf16.mxu1 %v880_v53  ;;  %1003 = vmatpush1.bf16.msra.mxu0 %v1002_v59  ;;  %v131_v52 = vld [vmem:[#allocation5 + $0x1e0] sm:$0xff]  ;;  %v133_v53 = vld [vmem:[#allocation5 + $0x1f0] sm:$0xff]  ;;  %v136_v54 = vld [vmem:[#allocation5 + $0x208] sm:$0xff]  ;;  %v1022_v56 = vpack.c.bf16 %v253_v47, %v251_v46  ;;  %v1024_v57 = vpack.c.bf16 %v258_v50, %v256_v49 }
  0x51   :  { %1005 = vmatprep.subr.bf16.mxu0 %v1004_v60  ;;  %v138_v55 = vld [vmem:[#allocation5 + $0x218] sm:$0xff]  ;;  %v255_v58 = vld [vmem:[#allocation5 + $0x5c0] sm:$0xff]  ;;  %v257_v59 = vld [vmem:[#allocation5 + $0x5d0] sm:$0xff]  ;;  %v902_v60 = vpack.c.bf16 %v133_v53, %v131_v52 }
  0x52   :  { %v260_v61 = vld [vmem:[#allocation5 + $0x5e8] sm:$0xff]  ;;  %v262_v62 = vld [vmem:[#allocation5 + $0x5f8] sm:$0xff]  ;;  %v135_v0 = vld [vmem:[#allocation5 + $0x200] sm:$0xff]  ;;  %v1026_v4 = vpack.c.bf16 %v257_v59, %v255_v58 }
  0x53   :  { %883 = vmatpush1.bf16.msra.mxu1 %v882_v63  ;;  %v904_v63 = vpack.c.bf16 %v138_v55, %v136_v54  ;;  %v137_v1 = vld [vmem:[#allocation5 + $0x210] sm:$0xff]  ;;  %v142_v3 = vld [vmem:[#allocation5 + $0x238] sm:$0xff]  ;;  %v1028_v5 = vpack.c.bf16 %v262_v62, %v260_v61  ;;  %v259_v6 = vld [vmem:[#allocation5 + $0x5e0] sm:$0xff] }
  0x54   :  { %885 = vmatprep.subr.bf16.mxu1 %v884_v2  ;;  %1007 = vmatpush1.bf16.msra.mxu0 %v1006_v7  ;;  %v140_v2 = vld [vmem:[#allocation5 + $0x228] sm:$0xff]  ;;  %v261_v7 = vld [vmem:[#allocation5 + $0x5f0] sm:$0xff]  ;;  %v906_v9 = vpack.c.bf16 %v137_v1, %v135_v0  ;;  %v139_v13 = vld [vmem:[#allocation5 + $0x220] sm:$0xff] }
  0x55   :  { %1009 = vmatprep.subr.bf16.mxu0 %v1008_v8  ;;  %v43_v8 = vld [vmem:[#allocation2] sm:$0xff]  ;;  %v264_v10 = vld [vmem:[#allocation5 + $0x608] sm:$0xff]  ;;  %v908_v12 = vpack.c.bf16 %v142_v3, %v140_v2  ;;  %v146_v16 = vld [vmem:[#allocation5 + $0x258] sm:$0xff]  ;;  %v1030_v17 = vpack.c.bf16 %v261_v7, %v259_v6 }
  0x56   :  { %v144_v15 = vld [vmem:[#allocation5 + $0x248] sm:$0xff]  ;;  %v143_v25 = vld [vmem:[#allocation5 + $0x240] sm:$0xff]  ;;  %v150_v28 = vld [vmem:[#allocation5 + $0x278] sm:$0xff] }
  0x57   :  { %887 = vmatpush1.bf16.msra.mxu1 %v886_v11  ;;  %v266_v11 = vld [vmem:[#allocation5 + $0x618] sm:$0xff]  ;;  %v268_v22 = vld [vmem:[#allocation5 + $0x628] sm:$0xff]  ;;  %v912_v24 = vpack.c.bf16 %v146_v16, %v144_v15  ;;  %v47_v29 = vld [vmem:[#allocation2 + $0x20] sm:$0xff] }
  0x58   :  { %889 = vmatprep.subr.bf16.mxu1 %v888_v14  ;;  %1011 = vmatpush1.bf16.msra.mxu0 %v1010_v19  ;;  %v141_v14 = vld [vmem:[#allocation5 + $0x230] sm:$0xff]  ;;  %v1032_v18 = vpack.c.bf16 %v266_v11, %v264_v10  ;;  %v263_v19 = vld [vmem:[#allocation5 + $0x600] sm:$0xff]  ;;  %v148_v27 = vld [vmem:[#allocation5 + $0x268] sm:$0xff] }
  0x59   :  { %1013 = vmatprep.subr.bf16.mxu0 %v1012_v20  ;;  %v265_v20 = vld [vmem:[#allocation5 + $0x610] sm:$0xff]  ;;  %v910_v21 = vpack.c.bf16 %v141_v14, %v139_v13  ;;  %v267_v31 = vld [vmem:[#allocation5 + $0x620] sm:$0xff]  ;;  %v272_v37 = vld [vmem:[#allocation5 + $0x648] sm:$0xff]  ;;  %v916_v40 = vpack.c.bf16 %v150_v28, %v148_v27  ;;  %v1170_v28 = vmov 0.0  }
  0x5a   :  { %v1034_v30 = vpack.c.bf16 %v265_v20, %v263_v19  ;;  %v55_v34 = vld [vmem:[#allocation2 + $0x60] sm:$0xff]  ;;  %v274_v38 = vld [vmem:[#allocation5 + $0x658] sm:$0xff]  ;;  %v149_v42 = vld [vmem:[#allocation5 + $0x270] sm:$0xff] }
  0x5b   :  { %891 = vmatpush1.bf16.msra.mxu1 %v890_v23  ;;  %v270_v23 = vld [vmem:[#allocation5 + $0x638] sm:$0xff]  ;;  %v51_v35 = vld [vmem:[#allocation2 + $0x40] sm:$0xff]  ;;  %v152_v43 = vld [vmem:[#allocation5 + $0x288] sm:$0xff] }
  0x5c   :  { %893 = vmatprep.subr.bf16.mxu1 %v892_v26  ;;  %1015 = vmatpush1.bf16.msra.mxu0 %v1014_v32  ;;  %v145_v26 = vld [vmem:[#allocation5 + $0x250] sm:$0xff]  ;;  %v1036_v32 = vpack.c.bf16 %v270_v23, %v268_v22  ;;  %v147_v41 = vld [vmem:[#allocation5 + $0x260] sm:$0xff]  ;;  %v54_v46 = vld [vmem:[#allocation2 + $0x58] sm:$0xff] }
  0x5d   :  { %1017 = vmatprep.subr.bf16.mxu0 %v1016_v33  ;;  %v269_v33 = vld [vmem:[#allocation5 + $0x630] sm:$0xff]  ;;  %v58_v47 = vld [vmem:[#allocation2 + $0x78] sm:$0xff]  ;;  %v271_v49 = vld [vmem:[#allocation5 + $0x640] sm:$0xff]  ;;  %v918_v52 = vpack.c.bf16 %v149_v42, %v147_v41 }
  0x5e   :  { %v273_v50 = vld [vmem:[#allocation5 + $0x650] sm:$0xff]  ;;  %v276_v53 = vld [vmem:[#allocation5 + $0x668] sm:$0xff]  ;;  %v278_v54 = vld [vmem:[#allocation5 + $0x678] sm:$0xff] }
  0x5f   :  { %895 = vmatpush1.bf16.msra.mxu1 %v894_v36  ;;  %v914_v36 = vpack.c.bf16 %v145_v26, %v143_v25  ;;  %v57_v55 = vld [vmem:[#allocation2 + $0x70] sm:$0xff]  ;;  %v158_v61 = vld [vmem:[#allocation5 + $0x2b8] sm:$0xff]  ;;  %v1042_v62 = vpack.c.bf16 %v273_v50, %v271_v49  ;;  %v1044_v0 = vpack.c.bf16 %v278_v54, %v276_v53  ;;  %v275_v1 = vld [vmem:[#allocation5 + $0x660] sm:$0xff] }
  0x60   :  { %897 = vmatprep.subr.bf16.mxu1 %v896_v39  ;;  %1019 = vmatpush1.bf16.msra.mxu0 %v1018_v44  ;;  %v50_v39 = vld [vmem:[#allocation2 + $0x38] sm:$0xff]  ;;  %v153_v58 = vld [vmem:[#allocation5 + $0x290] sm:$0xff]  ;;  %v64_v7 = vld [vmem:[#allocation2 + $0xa8] sm:$0xff] }
  0x61   :  { %1021 = vmatprep.subr.bf16.mxu0 %v1020_v45  ;;  %v154_v44 = vld [vmem:[#allocation5 + $0x298] sm:$0xff]  ;;  %v1038_v45 = vpack.c.bf16 %v269_v33, %v267_v31  ;;  %v65_v59 = vld [vmem:[#allocation2 + $0xb0] sm:$0xff]  ;;  %v68_v15 = vld [vmem:[#allocation2 + $0xc8] sm:$0xff] }
  0x62   :  { %v277_v2 = vld [vmem:[#allocation5 + $0x670] sm:$0xff]  ;;  %v282_v6 = vld [vmem:[#allocation5 + $0x698] sm:$0xff]  ;;  %v284_v20 = vld [vmem:[#allocation5 + $0x6a8] sm:$0xff] }
  0x63   :  { %899 = vmatpush1.bf16.msra.mxu1 %v898_v48  ;;  %v1040_v48 = vpack.c.bf16 %v274_v38, %v272_v37  ;;  %v69_v3 = vld [vmem:[#allocation2 + $0xd0] sm:$0xff]  ;;  %v46_v11 = vld [vmem:[#allocation2 + $0x18] sm:$0xff]  ;;  %v1046_v14 = vpack.c.bf16 %v277_v2, %v275_v1  ;;  %v159_v23 = vld [vmem:[#allocation5 + $0x2c0] sm:$0xff] }
  0x64   :  { %901 = vmatprep.subr.bf16.mxu1 %v900_v51  ;;  %1023 = vmatpush1.bf16.msra.mxu0 %v1022_v56  ;;  %v62_v51 = vld [vmem:[#allocation2 + $0x98] sm:$0xff]  ;;  %v920_v56 = vpack.c.bf16 %v154_v44, %v152_v43  ;;  %v157_v10 = vld [vmem:[#allocation5 + $0x2b0] sm:$0xff]  ;;  %v164_v25 = vld [vmem:[#allocation5 + $0x2e8] sm:$0xff] }
  0x65   :  { %1025 = vmatprep.subr.bf16.mxu0 %v1024_v57  ;;  %v151_v57 = vld [vmem:[#allocation5 + $0x280] sm:$0xff]  ;;  %v162_v13 = vld [vmem:[#allocation5 + $0x2d8] sm:$0xff]  ;;  %v285_v31 = vld [vmem:[#allocation5 + $0x6b0] sm:$0xff] }
  0x66   :  { %v166_v26 = vld [vmem:[#allocation5 + $0x2f8] sm:$0xff]  ;;  %v167_v41 = vld [vmem:[#allocation5 + $0x300] sm:$0xff]  ;;  %v169_v42 = vld [vmem:[#allocation5 + $0x310] sm:$0xff] }
  0x67   :  { %903 = vmatpush1.bf16.msra.mxu1 %v902_v60  ;;  %v156_v60 = vld [vmem:[#allocation5 + $0x2a8] sm:$0xff]  ;;  %v932_v33 = vpack.c.bf16 %v166_v26, %v164_v25  ;;  %v170_v37 = vld [vmem:[#allocation5 + $0x318] sm:$0xff]  ;;  %v173_v49 = vld [vmem:[#allocation5 + $0x330] sm:$0xff] }
  0x68   :  { %905 = vmatprep.subr.bf16.mxu1 %v904_v63  ;;  %1027 = vmatpush1.bf16.msra.mxu0 %v1026_v4  ;;  %v61_v63 = vld [vmem:[#allocation2 + $0x90] sm:$0xff]  ;;  %v922_v4 = vpack.c.bf16 %v153_v58, %v151_v57  ;;  %v172_v43 = vld [vmem:[#allocation5 + $0x328] sm:$0xff]  ;;  %v174_v44 = vld [vmem:[#allocation5 + $0x338] sm:$0xff] }
  0x69   :  { %1029 = vmatprep.subr.bf16.mxu0 %v1028_v5  ;;  %v280_v5 = vld [vmem:[#allocation5 + $0x688] sm:$0xff]  ;;  %v182_v58 = vld [vmem:[#allocation5 + $0x378] sm:$0xff]  ;;  %v45_v26 = vld [vmem:[#allocation2 + $0x10] sm:$0xff] }
  0x6a   :  { %365 = vmatmul.mubr.f32.vlgmr.msra.gmra.mrb[0].mxu1 %v43_v8  ;;  %v924_v8 = vpack.c.bf16 %v158_v61, %v156_v60  ;;  %v1048_v16 = vpack.c.bf16 %v282_v6, %v280_v5  ;;  %v176_v50 = vld [vmem:[#allocation5 + $0x348] sm:$0xff]  ;;  %v186_v1 = vld [vmem:[#allocation5 + $0x398] sm:$0xff]  ;;  %v183_v5 = vld [vmem:[#allocation5 + $0x380] sm:$0xff] }
  0x6b   :  { %907 = vmatpush1.bf16.msra.mxu1 %v906_v9  ;;  %370 = vmatprep.mubr.f32.mxu1 %v51_v35  ;;  %v155_v9 = vld [vmem:[#allocation5 + $0x2a0] sm:$0xff]  ;;  %v165_v35 = vld [vmem:[#allocation5 + $0x2f0] sm:$0xff]  ;;  %v180_v57 = vld [vmem:[#allocation5 + $0x368] sm:$0xff] }
  0x6c   :  { %909 = vmatprep.subr.bf16.mxu1 %v908_v12  ;;  %1031 = vmatpush1.bf16.msra.mxu0 %v1030_v17  ;;  %v160_v12 = vld [vmem:[#allocation5 + $0x2c8] sm:$0xff]  ;;  %v279_v17 = vld [vmem:[#allocation5 + $0x680] sm:$0xff]  ;;  %v926_v19 = vpack.c.bf16 %v157_v10, %v155_v9  ;;  %v948_v61 = vpack.c.bf16 %v182_v58, %v180_v57  ;;  %v70_v2 = vld [vmem:[#allocation2 + $0xd8] sm:$0xff] }
  0x6d   :  { %1033 = vmatprep.subr.bf16.mxu0 %v1032_v18  ;;  %v281_v18 = vld [vmem:[#allocation5 + $0x690] sm:$0xff]  ;;  %v928_v22 = vpack.c.bf16 %v162_v13, %v160_v12  ;;  %v192_v13 = vld [vmem:[#allocation5 + $0x3c8] sm:$0xff] }
  0x6e   :  { %371 = vmatmul.mubr.f32.gmra.mrb[2].mxu1 %v50_v39  ;;  %v1050_v27 = vpack.c.bf16 %v281_v18, %v279_v17  ;;  %v185_v6 = vld [vmem:[#allocation5 + $0x390] sm:$0xff]  ;;  %v191_v17 = vld [vmem:[#allocation5 + $0x3c0] sm:$0xff] }
  0x6f   :  { %911 = vmatpush1.bf16.msra.mxu1 %v910_v21  ;;  %543 = vmatmul.mubr.f32.vlgmr.msra.gmra.mrb[0].mxu0 %v47_v29  ;;  %v286_v21 = vld [vmem:[#allocation5 + $0x6b8] sm:$0xff]  ;;  %v954_v9 = vpack.c.bf16 %v185_v6, %v183_v5  ;;  %v189_v12 = vld [vmem:[#allocation5 + $0x3b0] sm:$0xff] }
  0x70   :  { %913 = vmatprep.subr.bf16.mxu1 %v912_v24  ;;  %1035 = vmatpush1.bf16.msra.mxu0 %v1034_v30  ;;  %v161_v24 = vld [vmem:[#allocation5 + $0x2d0] sm:$0xff]  ;;  %v1052_v29 = vpack.c.bf16 %v286_v21, %v284_v20  ;;  %v283_v30 = vld [vmem:[#allocation5 + $0x6a0] sm:$0xff]  ;;  %v198_v20 = vld [vmem:[#allocation5 + $0x3f8] sm:$0xff] }
  0x71   :  { %548 = vmatprep.mubr.f32.mxu0 %v55_v34  ;;  %1037 = vmatprep.subr.bf16.mxu0 %v1036_v32  ;;  %v930_v32 = vpack.c.bf16 %v161_v24, %v159_v23  ;;  %v163_v34 = vld [vmem:[#allocation5 + $0x2e0] sm:$0xff]  ;;  %v1054_v38 = vpack.c.bf16 %v285_v31, %v283_v30  ;;  %v193_v18 = vld [vmem:[#allocation5 + $0x3d0] sm:$0xff] }
  0x72   :  { %376 = vmatprep.mubr.f32.mxu1 %v58_v47  ;;  %v934_v39 = vpack.c.bf16 %v165_v35, %v163_v34  ;;  %v940_v47 = vpack.c.bf16 %v174_v44, %v172_v43  ;;  %v962_v21 = vpack.c.bf16 %v193_v18, %v191_v17  ;;  %v195_v23 = vld [vmem:[#allocation5 + $0x3e0] sm:$0xff]  ;;  %v197_v24 = vld [vmem:[#allocation5 + $0x3f0] sm:$0xff] }
  0x73   :  { %915 = vmatpush1.bf16.msra.mxu1 %v914_v36  ;;  %549 = vmatmul.mubr.f32.gmra.mrb[2].mxu0 %v54_v46  ;;  %v168_v36 = vld [vmem:[#allocation5 + $0x308] sm:$0xff]  ;;  %v938_v46 = vpack.c.bf16 %v169_v42, %v167_v41  ;;  %v966_v25 = vpack.c.bf16 %v197_v24, %v195_v23  ;;  %v59_v30 = vld [vmem:[#allocation2 + $0x80] sm:$0xff] }
  0x74   :  { %917 = vmatprep.subr.bf16.mxu1 %v916_v40  ;;  %1039 = vmatpush1.bf16.msra.mxu0 %v1038_v45  ;;  %v936_v40 = vpack.c.bf16 %v170_v37, %v168_v36  ;;  %v49_v45 = vld [vmem:[#allocation2 + $0x30] sm:$0xff]  ;;  %v67_v31 = vld [vmem:[#allocation2 + $0xc0] sm:$0xff] }
  0x75   :  { %554 = vmatprep.mubr.f32.mxu0 %v62_v51  ;;  %1041 = vmatprep.subr.bf16.mxu0 %v1040_v48  ;;  %v171_v48 = vld [vmem:[#allocation5 + $0x320] sm:$0xff]  ;;  %v178_v51 = vld [vmem:[#allocation5 + $0x358] sm:$0xff] }
  0x76   :  { %377 = vmatmul.mubr.f32.gmra.mrb[4].mxu1 %v57_v55  ;;  %v942_v53 = vpack.c.bf16 %v173_v49, %v171_v48  ;;  %v944_v54 = vpack.c.bf16 %v178_v51, %v176_v50  ;;  %v175_v55 = vld [vmem:[#allocation5 + $0x340] sm:$0xff] }
  0x77   :  { %919 = vmatpush1.bf16.msra.mxu1 %v918_v52  ;;  %382 = vmatprep.mubr.f32.mxu1 %v65_v59  ;;  %v56_v52 = vld [vmem:[#allocation2 + $0x68] sm:$0xff]  ;;  %v63_v59 = vld [vmem:[#allocation2 + $0xa0] sm:$0xff] }
  0x78   :  { %921 = vmatprep.subr.bf16.mxu1 %v920_v56  ;;  %555 = vmatmul.mubr.f32.gmra.mrb[4].mxu0 %v61_v63  ;;  %v177_v56 = vld [vmem:[#allocation5 + $0x350] sm:$0xff] }
  0x79   :  { %1043 = vmatpush1.bf16.msra.mxu0 %v1042_v62  ;;  %560 = vmatprep.mubr.f32.mxu0 %v69_v3  ;;  %v946_v60 = vpack.c.bf16 %v177_v56, %v175_v55  ;;  %v179_v62 = vld [vmem:[#allocation5 + $0x360] sm:$0xff]  ;;  %v181_v63 = vld [vmem:[#allocation5 + $0x370] sm:$0xff] }
  0x7a   :  { %1045 = vmatprep.subr.bf16.mxu0 %v1044_v0  ;;  %383 = vmatmul.mubr.f32.gmra.mrb[6].mxu1 %v64_v7  ;;  %v184_v0 = vld [vmem:[#allocation5 + $0x388] sm:$0xff]  ;;  %v950_v3 = vpack.c.bf16 %v181_v63, %v179_v62 }
  0x7b   :  { %923 = vmatpush1.bf16.msra.mxu1 %v922_v4  ;;  %453 = vmatprep.mubr.f32.mxu1 %v46_v11  ;;  %v952_v4 = vpack.c.bf16 %v186_v1, %v184_v0  ;;  %v188_v7 = vld [vmem:[#allocation5 + $0x3a8] sm:$0xff]  ;;  %v187_v11 = vld [vmem:[#allocation5 + $0x3a0] sm:$0xff] }
  0x7c   :  { %925 = vmatprep.subr.bf16.mxu1 %v924_v8  ;;  %561 = vmatmul.mubr.f32.gmra.mrb[6].mxu0 %v68_v15  ;;  %v190_v8 = vld [vmem:[#allocation5 + $0x3b8] sm:$0xff]  ;;  %v958_v15 = vpack.c.bf16 %v189_v12, %v187_v11 }
  0x7d   :  { %1047 = vmatpush1.bf16.msra.mxu0 %v1046_v14  ;;  %631 = vmatprep.mubr.f32.mxu0 %v1170_v28  ;;  %v956_v10 = vpack.c.bf16 %v190_v8, %v188_v7  ;;  %v194_v14 = vld [vmem:[#allocation5 + $0x3d8] sm:$0xff] }
  0x7e   :  { %1049 = vmatprep.subr.bf16.mxu0 %v1048_v16  ;;  %v960_v16 = vpack.c.bf16 %v194_v14, %v192_v13 }
  0x7f   :  { %927 = vmatpush1.bf16.msra.mxu1 %v926_v19  ;;  %v196_v19 = vld [vmem:[#allocation5 + $0x3e8] sm:$0xff] }
  0x80   :  { %929 = vmatprep.subr.bf16.mxu1 %v928_v22  ;;  %v964_v22 = vpack.c.bf16 %v198_v20, %v196_v19 }
  0x81   :  { %1051 = vmatpush1.bf16.msra.mxu0 %v1050_v27  ;;  %v53_v27 = vld [vmem:[#allocation2 + $0x50] sm:$0xff] }
  0x82   :  { %1053 = vmatprep.subr.bf16.mxu0 %v1052_v29  ;;  %v60_v29 = vld [vmem:[#allocation2 + $0x88] sm:$0xff] }
  0x83   :  { %931 = vmatpush1.bf16.msra.mxu1 %v930_v32  ;;  %v66_v32 = vld [vmem:[#allocation2 + $0xb8] sm:$0xff] }
  0x84   :  { %933 = vmatprep.subr.bf16.mxu1 %v932_v33 }
  0x85   :  { %1055 = vmatpush1.bf16.msra.mxu0 %v1054_v38 }
  0x87   :  { %935 = vmatpush1.bf16.msra.mxu1 %v934_v39 }
  0x88   :  { %937 = vmatprep.subr.bf16.mxu1 %v936_v40  ;;  %836 = vmatmul.mubr.msk.f32.vlgmr.msra.gmra.mrb[0].mxu0 %vm287_vm0, %v49_v45 }
  0x89   :  { %637 = vmatprep.mubr.f32.mxu0 %v1170_v28 }
  0x8b   :  { %939 = vmatpush1.bf16.msra.mxu1 %v938_v46 }
  0x8c   :  { %941 = vmatprep.subr.bf16.mxu1 %v940_v47  ;;  %837 = vmatmul.mubr.msk.f32.gmra.mrb[2].mxu0 %vm287_vm0, %v56_v52 }
  0x8d   :  { %643 = vmatprep.mubr.f32.mxu0 %v1170_v28 }
  0x8f   :  { %943 = vmatpush1.bf16.msra.mxu1 %v942_v53 }
  0x90   :  { %945 = vmatprep.subr.bf16.mxu1 %v944_v54  ;;  %838 = vmatmul.mubr.msk.f32.gmra.mrb[4].mxu0 %vm287_vm0, %v63_v59 }
  0x91   :  { %649 = vmatprep.mubr.f32.mxu0 %v1170_v28  ;;  %v52_v28 = vld [vmem:[#allocation2 + $0x48] sm:$0xff] }
  0x93   :  { %947 = vmatpush1.bf16.msra.mxu1 %v946_v60 }
  0x94   :  { %949 = vmatprep.subr.bf16.mxu1 %v948_v61  ;;  %839 = vmatmul.mubr.msk.f32.gmra.mrb[6].mxu0 %vm287_vm0, %v70_v2 }
  0x97   :  { %951 = vmatpush1.bf16.msra.mxu1 %v950_v3 }
  0x98   :  { %953 = vmatprep.subr.bf16.mxu1 %v952_v4 }
  0x9b   :  { %955 = vmatpush1.bf16.msra.mxu1 %v954_v9 }
  0x9c   :  { %957 = vmatprep.subr.bf16.mxu1 %v956_v10 }
  0x9f   :  { %959 = vmatpush1.bf16.msra.mxu1 %v958_v15 }
  0xa0   :  { %961 = vmatprep.subr.bf16.mxu1 %v960_v16 }
  0xa3   :  { %963 = vmatpush1.bf16.msra.mxu1 %v962_v21 }
  0xa4   :  { %965 = vmatprep.subr.bf16.mxu1 %v964_v22 }
  0xa7   :  { %967 = vmatpush1.bf16.msra.mxu1 %v966_v25 }
  0xaa   :  { %454 = vmatmul.mubr.f32.vlgmr.msra.gmra.mrb[0].mxu1 %v45_v26 }
  0xab   :  { %459 = vmatprep.mubr.f32.mxu1 %v53_v27 }
  0xae   :  { %460 = vmatmul.mubr.f32.gmra.mrb[2].mxu1 %v52_v28 }
  0xaf   :  { %465 = vmatprep.mubr.f32.mxu1 %v60_v29 }
  0xb2   :  { %466 = vmatmul.mubr.f32.gmra.mrb[4].mxu1 %v59_v30 }
  0xb3   :  { %471 = vmatprep.mubr.f32.mxu1 %v67_v31 }
  0xb6   :  { %472 = vmatmul.mubr.f32.gmra.mrb[6].mxu1 %v66_v32 }
 0x15b   :  { %v633_v33 = vpop.f32.mrb[0].mxu0 }
 0x15c   :  { %v635_v34 = vpop.f32.mrb[1].mxu0 }
 0x15f   :  { %v639_v35 = vpop.f32.mrb[2].mxu0 }
 0x160   :  { %v641_v36 = vpop.f32.mrb[3].mxu0 }
 0x163   :  { %v645_v37 = vpop.f32.mrb[4].mxu0 }
 0x164   :  { %v647_v38 = vpop.f32.mrb[5].mxu0 }
 0x167   :  { %v651_v39 = vpop.f32.mrb[6].mxu0 }
 0x168   :  { %v653_v40 = vpop.f32.mrb[7].mxu0 }
 0x17d   :  { %v455_v41 = vpop.f32.mrb[0].mxu1 }
 0x17e   :  { %v1225_v42 = vadd.f32 %v633_v33, %v455_v41  ;;  %v457_v43 = vpop.f32.mrb[1].mxu1 }
 0x17f   :  { %v1227_v44 = vadd.f32 %v635_v34, %v457_v43 }
 0x180   :  { %v674_v55 = vmul.f32 %v1225_v42, %v1225_v42 }
 0x181   :  { %v461_v45 = vpop.f32.mrb[2].mxu1  ;;  %v675_v58 = vmul.f32 %v1227_v44, %v1227_v44 }
 0x182   :  { %v1229_v46 = vadd.f32 %v639_v35, %v461_v45  ;;  %v463_v47 = vpop.f32.mrb[3].mxu1 }
 0x183   :  { %v1231_v48 = vadd.f32 %v641_v36, %v463_v47 }
 0x184   :  { %v676_v50 = vmul.f32 %v1229_v46, %v1229_v46  ;;  %v656_v56 = vadd.f32 %v1229_v46, %v1225_v42 }
 0x185   :  { %v467_v49 = vpop.f32.mrb[4].mxu1  ;;  %v677_v53 = vmul.f32 %v1231_v48, %v1231_v48  ;;  %v665_v59 = vadd.f32 %v1231_v48, %v1227_v44 }
 0x186   :  { %v1235_v51 = vadd.f32 %v645_v37, %v467_v49  ;;  %v469_v52 = vpop.f32.mrb[5].mxu1  ;;  %v682_v62 = vadd.f32 %v676_v50, %v674_v55  ;;  %v704_v37 = vlaneseq }
 0x187   :  { %v1239_v54 = vadd.f32 %v647_v38, %v469_v52  ;;  %v691_v2 = vadd.f32 %v677_v53, %v675_v58 }
 0x188   :  { %v678_v57 = vmul.f32 %v1235_v51, %v1235_v51  ;;  %v657_v63 = vadd.f32 %v1235_v51, %v656_v56  ;;  %v705_v38 = vand.u32 127, %v704_v37 }
 0x189   :  { %v679_v60 = vmul.f32 %v1239_v54, %v1239_v54  ;;  %v473_v61 = vpop.f32.mrb[6].mxu1  ;;  %v666_v3 = vadd.f32 %v1239_v54, %v665_v59 }
 0x18a   :  { %v1254_v0 = vadd.f32 %v651_v39, %v473_v61  ;;  %v475_v1 = vpop.f32.mrb[7].mxu1  ;;  %v683_v5 = vadd.f32 %v682_v62, %v678_v57  ;;  %vm706_vm1 = vcmp.lt.s32.totalorder %v705_v38, 16  ;;  %vm723_vm2 = vcmp.lt.s32.totalorder %v705_v38, 32 }
 0x18b   :  { %v1257_v4 = vadd.f32 %v653_v40, %v475_v1  ;;  %v692_v8 = vadd.f32 %v691_v2, %v679_v60  ;;  %vm740_vm3 = vcmp.lt.s32.totalorder %v705_v38, 64 }
 0x18c   :  { %v658_v6 = vadd.f32 %v1254_v0, %v657_v63  ;;  %v680_v7 = vmul.f32 %v1254_v0, %v1254_v0 }
 0x18d   :  { %v667_v9 = vadd.f32 %v1257_v4, %v666_v3  ;;  %v681_v10 = vmul.f32 %v1257_v4, %v1257_v4 }
 0x18e   :  { %v659_v11 = vrot.slane %v658_v6, 4  ;;  %v684_v12 = vadd.f32 %v683_v5, %v680_v7 }
 0x18f   :  { %v668_v13 = vrot.slane %v667_v9, 4  ;;  %v693_v14 = vadd.f32 %v692_v8, %v681_v10 }
 0x190   :  { %v660_v15 = vadd.f32 %v659_v11, %v658_v6  ;;  %v685_v16 = vrot.slane %v684_v12, 4 }
 0x191   :  { %v669_v17 = vadd.f32 %v668_v13, %v667_v9  ;;  %v694_v18 = vrot.slane %v693_v14, 4 }
 0x192   :  { %v661_v19 = vrot.slane %v660_v15, 2  ;;  %v686_v20 = vadd.f32 %v685_v16, %v684_v12 }
 0x193   :  { %v670_v21 = vrot.slane %v669_v17, 2  ;;  %v695_v22 = vadd.f32 %v694_v18, %v693_v14 }
 0x194   :  { %v662_v23 = vadd.f32 %v661_v19, %v660_v15  ;;  %v687_v24 = vrot.slane %v686_v20, 2 }
 0x195   :  { %v671_v25 = vadd.f32 %v670_v21, %v669_v17  ;;  %v696_v26 = vrot.slane %v695_v22, 2 }
 0x196   :  { %v663_v27 = vrot.slane %v662_v23, 1  ;;  %v688_v28 = vadd.f32 %v687_v24, %v686_v20 }
 0x197   :  { %v697_v29 = vadd.f32 %v696_v26, %v695_v22  ;;  %v672_v32 = vrot.slane %v671_v25, 1  ;;  %v764_v26 = vshrl.u32 %v704_v37, 7 }
 0x198   :  { %v664_v30 = vadd.f32 %v663_v27, %v662_v23  ;;  %v689_v31 = vrot.slane %v688_v28, 1 }
 0x199   :  { %v698_v34 = vrot.slane %v697_v29, 1  ;;  %v673_v35 = vadd.f32 %v672_v32, %v671_v25  ;;  %v765_v27 = vsub.s32 0, %v764_v26 }
 0x19a   :  { %700 = vrot.lane.b32.xlu0 %v664_v30, %s1169_s9  ;;  %v690_v33 = vadd.f32 %v689_v31, %v688_v28  ;;  %v769_v28 = vsub.s32 1, %v764_v26 }
 0x19b   :  { %v699_v36 = vadd.f32 %v698_v34, %v697_v29  ;;  %v761_v29 = vld [vmem:[%s1297_s2] sm:$0x3]  ;;  %s1173_s2 = smov [#allocation7]  }
 0x19c   :  { %711 = vrot.lane.b32.xlu1 %v690_v33, %s1169_s9  ;;  %v770_v31 = vrot.slane %v761_v29, %v769_v28  ;;  %s823_s15 = sshll.u32 %s1173_s2, 4  ;;  %s824_s15 = int_to_ptr.vmem [resolvable:$true] %s823_s15 }
 0x19d   :  { %s1136_s16 = scalar_lea.vmem %s824_s15, 1024  ;;  %p1141_p3 = scmp.lt.s32.totalorder %s824_s15, %s824_s15 }
 0x19e   :  { %702 = vrot.lane.b32.xlu0 %v673_v35, %s1169_s9  ;;  %p1137_p2 = scmp.ne.s32.totalorder %s824_s15, %s1136_s16  ;;  %p1142_p4 = scmp.lt.s32.totalorder %s1136_s16, %s1136_s16 }
 0x1a0   :  { %713 = vrot.lane.b32.xlu1 %v699_v36, %s1169_s9  ;;  %p1143_p5 = por %p1142_p4, %p1141_p3 }
 0x1a2   :  { %p1144_p6 = pnand %p1143_p5, %p1137_p2 }
 0x20c   :  { %v701_v39 = vpop.permute.xlu0 %700 }
 0x20e   :  { %v712_v40 = vpop.permute.xlu1 %711 }
 0x210   :  { %v703_v41 = vpop.permute.xlu0 %702 }
 0x211   :  { %v707_v43 = vsel %vm706_vm1, %v701_v39, %v703_v41  ;;  %v708_v45 = vsel %vm706_vm1, %v703_v41, %v701_v39 }
 0x212   :  { %v709_v47 = vadd.f32 %v708_v45, %v664_v30  ;;  %v710_v49 = vadd.f32 %v707_v43, %v673_v35  ;;  %v714_v50 = vpop.permute.xlu1 %713  ;;  %v766_v30 = vrot.slane %v761_v29, %v765_v27 }
 0x213   :  { %v715_v52 = vsel %vm706_vm1, %v712_v40, %v714_v50  ;;  %v716_v53 = vsel %vm706_vm1, %v714_v50, %v712_v40 }
 0x214   :  { %719 = vrot.lane.b32.xlu0 %v709_v47, %s1171_s1  ;;  %721 = vrot.lane.b32.xlu1 %v710_v49, %s1171_s1  ;;  %v717_v55 = vadd.f32 %v716_v53, %v690_v33  ;;  %v718_v56 = vadd.f32 %v715_v52, %v699_v36 }
 0x218   :  { %728 = vrot.lane.b32.xlu0 %v717_v55, %s1171_s1  ;;  %730 = vrot.lane.b32.xlu1 %v718_v56, %s1171_s1 }
 0x286   :  { %v720_v57 = vpop.permute.xlu0 %719  ;;  %v722_v58 = vpop.permute.xlu1 %721 }
 0x287   :  { %v724_v59 = vsel %vm723_vm2, %v720_v57, %v722_v58  ;;  %v725_v60 = vsel %vm723_vm2, %v722_v58, %v720_v57 }
 0x288   :  { %v726_v61 = vadd.f32 %v725_v60, %v709_v47  ;;  %v727_v62 = vadd.f32 %v724_v59, %v710_v49 }
 0x28a   :  { %v729_v63 = vpop.permute.xlu0 %728  ;;  %736 = vrot.lane.b32.xlu0 %v726_v61, %s1172_s12  ;;  %738 = vrot.lane.b32.xlu1 %v727_v62, %s1172_s12  ;;  %v731_v1 = vpop.permute.xlu1 %730 }
 0x28b   :  { %v732_v2 = vsel %vm723_vm2, %v729_v63, %v731_v1  ;;  %v733_v3 = vsel %vm723_vm2, %v731_v1, %v729_v63 }
 0x28c   :  { %v734_v5 = vadd.f32 %v733_v3, %v717_v55  ;;  %v735_v6 = vadd.f32 %v732_v2, %v718_v56 }
 0x28e   :  { %745 = vrot.lane.b32.xlu0 %v734_v5, %s1172_s12  ;;  %747 = vrot.lane.b32.xlu1 %v735_v6, %s1172_s12 }
 0x2fc   :  { %v737_v7 = vpop.permute.xlu0 %736  ;;  %v739_v8 = vpop.permute.xlu1 %738 }
 0x2fd   :  { %v741_v9 = vsel %vm740_vm3, %v737_v7, %v739_v8  ;;  %v742_v10 = vsel %vm740_vm3, %v739_v8, %v737_v7 }
 0x2fe   :  { %v743_v11 = vadd.f32 %v742_v10, %v726_v61  ;;  %v744_v12 = vadd.f32 %v741_v9, %v727_v62 }
 0x300   :  { %v753_v13 = vadd.f32 %v744_v12, %v743_v11  ;;  %v746_v14 = vpop.permute.xlu0 %745  ;;  %v748_v15 = vpop.permute.xlu1 %747 }
 0x301   :  { %v749_v16 = vsel %vm740_vm3, %v746_v14, %v748_v15  ;;  %v750_v17 = vsel %vm740_vm3, %v748_v15, %v746_v14 }
 0x302   :  { %v755_v18 = vmul.f32 0.001953125, %v753_v13  ;;  %v751_v19 = vadd.f32 %v750_v17, %v734_v5  ;;  %v752_v20 = vadd.f32 %v749_v16, %v735_v6 }
 0x304   :  { %v754_v21 = vadd.f32 %v752_v20, %v751_v19  ;;  %v757_v22 = vmul.f32 %v755_v18, %v755_v18  ;;  %v775_v33 = vsub.f32 0.0, %v755_v18 }
 0x306   :  { %v756_v23 = vmul.f32 0.001953125, %v754_v21 }
 0x308   :  { %v758_v24 = vsub.f32 %v756_v23, %v757_v22 }
 0x30a   :  { %v759_v25 = vadd.f32 1e-05, %v758_v24 }
 0x30c   :  { %1090 = vrsqrt.f32 %v759_v25 }
 0x316   :  { %v1091_v32 = vpop.eup %1090 }
 0x317   :  { %v773_v34 = vmul.f32 %v1091_v32, %v766_v30  ;;  %v774_v35 = vmul.f32 %v1091_v32, %v770_v31 }
 0x319   :  { %v776_v36 = vmul.f32 %v775_v33, %v773_v34  ;;  %v777_v38 = vmul.f32 %v775_v33, %v774_v35  ;;  %v781_v39 = vrot.slane %v773_v34, %v765_v27  ;;  %v785_v40 = vrot.slane %v774_v35, %v765_v27 }
 0x31b   :  { %v797_v41 = vrot.slane %v776_v36, %v765_v27  ;;  %v801_v43 = vrot.slane %v777_v38, %v765_v27  ;;  %v786_v37 = vmul.f32 %v1225_v42, %v781_v39  ;;  %v787_v45 = vmul.f32 %v1227_v44, %v785_v40 }
 0x31c   :  { %v788_v47 = vmul.f32 %v1229_v46, %v781_v39  ;;  %v789_v49 = vmul.f32 %v1231_v48, %v785_v40  ;;  %v790_v50 = vmul.f32 %v1235_v51, %v781_v39  ;;  %v791_v52 = vmul.f32 %v1239_v54, %v785_v40 }
 0x31d   :  { %v792_v53 = vmul.f32 %v1254_v0, %v781_v39  ;;  %v793_v55 = vmul.f32 %v1257_v4, %v785_v40  ;;  %v802_v56 = vadd.f32 %v797_v41, %v786_v37  ;;  %v803_v57 = vadd.f32 %v801_v43, %v787_v45 }
 0x31e   :  { %v804_v58 = vadd.f32 %v797_v41, %v788_v47  ;;  %v805_v42 = vadd.f32 %v801_v43, %v789_v49  ;;  %v806_v59 = vadd.f32 %v797_v41, %v790_v50  ;;  %v807_v44 = vadd.f32 %v801_v43, %v791_v52 }
 0x31f   :  { %v808_v60 = vadd.f32 %v797_v41, %v792_v53  ;;  %v809_v46 = vadd.f32 %v801_v43, %v793_v55  ;;  %810 = vst [vmem:[#allocation7] sm:$0xff] %v802_v56  ;;  %811 = vst [vmem:[#allocation7 + $0x8] sm:$0xff] %v803_v57 }
 0x320   :  { %812 = vst [vmem:[#allocation7 + $0x10] sm:$0xff] %v804_v58  ;;  %813 = vst [vmem:[#allocation7 + $0x18] sm:$0xff] %v805_v42 }
 0x321   :  { %814 = vst [vmem:[#allocation7 + $0x20] sm:$0xff] %v806_v59  ;;  %815 = vst [vmem:[#allocation7 + $0x28] sm:$0xff] %v807_v44 }
 0x322   :  { %816 = vst [vmem:[#allocation7 + $0x30] sm:$0xff] %v808_v60  ;;  %817 = vst [vmem:[#allocation7 + $0x38] sm:$0xff] %v809_v46 }
 0x323   :  { %1147 = shalt.err (!%p1144_p6)
}
 0x324   :  { %s1148_s19 = scalar_lea.hbm %s1298_s3, 1024 }
 0x325   :  { %p1149_p7 = scmp.ne.s32.totalorder %s1298_s3, %s1148_s19  ;;  %p1152_p8 = scmp.lt.u32.totalorder %s1148_s19, %s1298_s3 }
 0x327   :  { %p1154_p9 = pnand %p1152_p8, %p1149_p7 }
 0x329   :  { %1157 = shalt.err (!%p1154_p9)
}
 0x32a   :  { %829 = dma.vmem_to_hbm [thread:$0]  %s824_s15, 1024, %s1298_s3, [#allocation4], %s1168_s0, %s1168_s0, %s1169_s9  }
 0x32b   :  { %1162 = dma.done.wait [#allocation4], 1024  }
 0x32c   :  { %1163 = vsyncadd [#allocation4], 4294966272 }
 0x32d   :  { %833 = vsyncpa [#allocation3], 1 }
 0x32e   :  { %834 = vsyncpa [#allocation6], 1 }
 0x32f   :  { %835 = vsyncpa [#allocation4], 1 }

</bundles_post_ra>
